<compile_context>
chip_gen: v5e
topology: v5e:2x2
jax: 0.10.0
libtpu: 0.0.40
codegen_flags: <defaults>
</compile_context>

<pallas_src>
import functools

import jax
import jax.numpy as jnp
import numpy as np
from jax.experimental import pallas as pl
from jax.experimental.pallas import tpu as pltpu

N_BINS = 15
NB_PAD = 128      # pad bins to one full lane-width vreg row
STATS_ROWS = 8    # [count, conf, acc, 0, 0, 0, 0, 0] -> one sublane-aligned row set


def _round_up(x, m):
    return ((x + m - 1) // m) * m


def _tce_kernel(logits_ref, labels_ref, o_ref, *, n_bins, block_n, total_n):
    i = pl.program_id(0)

    x = logits_ref[...].astype(jnp.float32)                 # (TN, C)
    tn, c = x.shape

    # mask padding rows of a partial last tile (keeps everything finite)
    row = jax.lax.broadcasted_iota(jnp.int32, (tn, 1), 0)
    valid = (row + i * block_n) < total_n                    # (TN, 1) bool
    x = jnp.where(valid, x, 0.0)

    # top-1 confidence without materializing softmax:
    #   max(softmax) == exp(0) / sum(exp(x - m)) == 1 / s   (exact in f32)
    m = jnp.max(x, axis=1, keepdims=True)                    # (TN, 1)
    s = jnp.sum(jnp.exp(x - m), axis=1, keepdims=True)       # (TN, 1)
    conf = 1.0 / s                                           # exact divide (bin edges!)

    # prediction = first index attaining the max (matches torch.max tie rule)
    col = jax.lax.broadcasted_iota(jnp.int32, (tn, c), 1)
    pred = jnp.min(jnp.where(x >= m, col, c), axis=1, keepdims=True)
    lab = labels_ref[...].astype(jnp.int32)                  # (TN, 1)
    acc = (pred == lab).astype(jnp.float32)                  # (TN, 1)

    # bin edges built in-kernel (no captured array constants); padded lanes
    # get impossible edges so they never match.
    lane = jax.lax.broadcasted_iota(jnp.int32, (1, NB_PAD), 1)
    lane_f = lane.astype(jnp.float32)
    inv_nb = 1.0 / float(n_bins)
    lo = jnp.where(lane < n_bins, lane_f * inv_nb, 2.0)
    up = jnp.where(lane < n_bins, (lane_f + 1.0) * inv_nb, 3.0)

    in_bin = jnp.logical_and(conf > lo, conf <= up)           # (TN, NB_PAD)
    in_bin = jnp.logical_and(in_bin, valid).astype(jnp.float32)

    # stats rows: [ones, conf, acc, 0...] -> one MXU contraction over TN
    c8 = jax.lax.broadcasted_iota(jnp.int32, (tn, STATS_ROWS), 1)
    stats = jnp.where(c8 == 0, 1.0,
            jnp.where(c8 == 1, conf,
            jnp.where(c8 == 2, acc, 0.0)))                    # (TN, 8)

    partial = jax.lax.dot_general(
        stats, in_bin,
        dimension_numbers=(((0,), (0,)), ((), ())),
        preferred_element_type=jnp.float32)                   # (8, NB_PAD)

    o_ref[0] = partial


def tce_loss(logits, labels, *, n_bins=N_BINS, block_n=None):
    """Pallas TCE loss. logits: (N, C) float (f32 or bf16), labels: (N,) int."""
    N, C = logits.shape
    itemsize = jnp.dtype(logits.dtype).itemsize

    if block_n is None:
        # ~4 MiB per logits buffer (double-buffered -> ~8 MiB), capped at 1024
        # rows and at the (8-rounded) batch size; always a multiple of 8 so the
        # (8, 128) BlockSpec constraint holds for any N.
        row_bytes = max(C * itemsize, 1)
        block_n = (4 * 1024 * 1024) // row_bytes
        block_n = max(8, min(block_n, 1024, _round_up(N, 8)))
    block_n = _round_up(int(block_n), 8)

    num_tiles = (N + block_n - 1) // block_n
    labels2d = labels.astype(jnp.int32).reshape(N, 1)

    kernel = functools.partial(
        _tce_kernel, n_bins=n_bins, block_n=block_n, total_n=N)

    partials = pl.pallas_call(
        kernel,
        out_shape=jax.ShapeDtypeStruct((num_tiles, STATS_ROWS, NB_PAD),
                                       jnp.float32),
        grid_spec=pltpu.PrefetchScalarGridSpec(
            num_scalar_prefetch=0,
            grid=(num_tiles,),
            in_specs=[
                pl.BlockSpec((block_n, C), lambda i: (i, 0)),
                pl.BlockSpec((block_n, 1), lambda i: (i, 0)),
            ],
            out_specs=pl.BlockSpec((1, STATS_ROWS, NB_PAD),
                                   lambda i: (i, 0, 0)),
        ),
        compiler_params=pltpu.CompilerParams(
            dimension_semantics=("parallel",),
            vmem_limit_bytes=48 * 1024 * 1024),
    )(logits, labels2d)                                       # native dtype in HBM

    # Tiny final combine in plain JAX (num_tiles x 8 x 128 elements).
    bins = jnp.sum(partials, axis=0)                          # (8, NB_PAD)
    counts = bins[0, :n_bins]
    sconf = bins[1, :n_bins]
    sacc = bins[2, :n_bins]
    nonzero = counts > 0.0
    safe = jnp.where(nonzero, counts, 1.0)
    gap = jnp.abs(sconf / safe - sacc / safe)
    tce = jnp.sum(jnp.where(nonzero, gap * counts, 0.0)) / float(N)
    return tce.reshape(1).astype(jnp.float32)


def tce_reference(logits, labels, n_bins=N_BINS):
    """Plain numpy/JAX reference mirroring the PyTorch forward."""
    softm = jax.nn.softmax(jnp.asarray(logits, jnp.float32), axis=1)
    conf = np.asarray(jnp.max(softm, axis=1))
    pred = np.asarray(jnp.argmax(softm, axis=1))
    accs = (pred == np.asarray(labels)).astype(np.float32)
    bb = np.linspace(0.0, 1.0, n_bins + 1).astype(np.float32)
    tce = 0.0
    for lo, up in zip(bb[:-1], bb[1:]):
        in_bin = (conf > lo) & (conf <= up)
        prob = in_bin.mean()
        if prob > 0:
            tce += abs(conf[in_bin].mean() - accs[in_bin].mean()) * prob
    return np.array([tce], dtype=np.float32)


if __name__ == "__main__":
    key = jax.random.PRNGKey(0)
    k1, k2 = jax.random.split(key)
    N, C = 64, 16
    logits = jax.random.normal(k1, (N, C), dtype=jnp.float32) * 2.0
    labels = jax.random.randint(k2, (N,), 0, C, dtype=jnp.int32)

    out = tce_loss(logits, labels)
    out = jax.block_until_ready(out)

    ref = tce_reference(logits, labels)
    np.testing.assert_allclose(np.asarray(out), ref, atol=1e-5, rtol=1e-5)
    print("KERNEL_OK")
</pallas_src>

<mosaic_0001>
module attributes {stable_mosaic.version = 11 : i64} {
  func.func @_tce_kernel(%arg0: i32, %arg1: memref<64x16xf32, #tpu.memory_space<vmem>>, %arg2: memref<64x1xi32, #tpu.memory_space<vmem>>, %arg3: memref<1x8x128xf32, #tpu.memory_space<vmem>>) attributes {dimension_semantics = [#tpu.dimension_semantics<parallel>], iteration_bounds = array<i64: 1>, scalar_prefetch = 0 : i64, scratch_operands = 0 : i64, tpu.core_type = #tpu.core_type<tc>, window_params = [{transform_indices = @transform_0, window_bounds = array<i64: 64, 16>}, {transform_indices = @transform_1, window_bounds = array<i64: 64, 1>}, {transform_indices = @transform_2, window_bounds = array<i64: 1, 8, 128>}]} {
    %c0 = arith.constant 0 : index
    %c0_0 = arith.constant 0 : index
    %0 = vector.load %arg1[%c0, %c0_0] : memref<64x16xf32, #tpu.memory_space<vmem>>, vector<64x16xf32>
    %1 = tpu.iota {dimensions = array<i32: 0>} : vector<64x1xi32>
    %c64_i32 = arith.constant 64 : i32
    %2 = arith.muli %arg0, %c64_i32 : i32
    %3 = vector.broadcast %2 : i32 to vector<64x1xi32>
    %4 = arith.addi %1, %3 : vector<64x1xi32>
    %c64_i32_1 = arith.constant 64 : i32
    %5 = vector.broadcast %c64_i32_1 : i32 to vector<64x1xi32>
    %6 = arith.cmpi slt, %4, %5 : vector<64x1xi32>
    %cst = arith.constant 0.000000e+00 : f32
    %7 = vector.shape_cast %6 : vector<64x1xi1> to vector<64x1xi1>
    %8 = vector.broadcast %7 : vector<64x1xi1> to vector<64x16xi1>
    %9 = vector.broadcast %cst : f32 to vector<64x16xf32>
    %10 = arith.select %8, %0, %9 : vector<64x16xi1>, vector<64x16xf32>
    %cst_2 = arith.constant dense<0xFF800000> : vector<64xf32>
    %11 = vector.multi_reduction <maximumf>, %10, %cst_2 [1] : vector<64x16xf32> to vector<64xf32>
    %12 = vector.shape_cast %11 : vector<64xf32> to vector<64x1xf32>
    %13 = vector.broadcast %12 : vector<64x1xf32> to vector<64x16xf32>
    %14 = arith.subf %10, %13 : vector<64x16xf32>
    %15 = math.exp %14 : vector<64x16xf32>
    %cst_3 = arith.constant dense<0.000000e+00> : vector<64xf32>
    %16 = vector.multi_reduction <add>, %15, %cst_3 [1] : vector<64x16xf32> to vector<64xf32>
    %17 = vector.shape_cast %16 : vector<64xf32> to vector<64x1xf32>
    %cst_4 = arith.constant 1.000000e+00 : f32
    %18 = vector.broadcast %cst_4 : f32 to vector<64x1xf32>
    %19 = arith.divf %18, %17 : vector<64x1xf32>
    %20 = tpu.iota {dimensions = array<i32: 1>} : vector<64x16xi32>
    %21 = vector.broadcast %12 : vector<64x1xf32> to vector<64x16xf32>
    %22 = arith.cmpf oge, %10, %21 : vector<64x16xf32>
    %c16_i32 = arith.constant 16 : i32
    %23 = vector.broadcast %c16_i32 : i32 to vector<64x16xi32>
    %24 = arith.select %22, %20, %23 : vector<64x16xi1>, vector<64x16xi32>
    %cst_5 = arith.constant dense<2147483647> : vector<64xi32>
    %25 = vector.multi_reduction <minsi>, %24, %cst_5 [1] : vector<64x16xi32> to vector<64xi32>
    %26 = vector.shape_cast %25 : vector<64xi32> to vector<64x1xi32>
    %c0_6 = arith.constant 0 : index
    %c0_7 = arith.constant 0 : index
    %27 = vector.load %arg2[%c0_6, %c0_7] : memref<64x1xi32, #tpu.memory_space<vmem>>, vector<64x1xi32>
    %28 = arith.cmpi eq, %26, %27 : vector<64x1xi32>
    %29 = arith.extui %28 : vector<64x1xi1> to vector<64x1xi32>
    %30 = arith.sitofp %29 : vector<64x1xi32> to vector<64x1xf32>
    %31 = tpu.iota {dimensions = array<i32: 1>} : vector<1x128xi32>
    %32 = arith.sitofp %31 : vector<1x128xi32> to vector<1x128xf32>
    %c15_i32 = arith.constant 15 : i32
    %33 = vector.broadcast %c15_i32 : i32 to vector<1x128xi32>
    %34 = arith.cmpi slt, %31, %33 : vector<1x128xi32>
    %cst_8 = arith.constant 0.0666666701 : f32
    %35 = vector.broadcast %cst_8 : f32 to vector<1x128xf32>
    %36 = arith.mulf %32, %35 : vector<1x128xf32>
    %cst_9 = arith.constant 2.000000e+00 : f32
    %37 = vector.broadcast %cst_9 : f32 to vector<1x128xf32>
    %38 = arith.select %34, %36, %37 : vector<1x128xi1>, vector<1x128xf32>
    %c15_i32_10 = arith.constant 15 : i32
    %39 = vector.broadcast %c15_i32_10 : i32 to vector<1x128xi32>
    %40 = arith.cmpi slt, %31, %39 : vector<1x128xi32>
    %cst_11 = arith.constant 1.000000e+00 : f32
    %41 = vector.broadcast %cst_11 : f32 to vector<1x128xf32>
    %42 = arith.addf %32, %41 : vector<1x128xf32>
    %cst_12 = arith.constant 0.0666666701 : f32
    %43 = vector.broadcast %cst_12 : f32 to vector<1x128xf32>
    %44 = arith.mulf %42, %43 : vector<1x128xf32>
    %cst_13 = arith.constant 3.000000e+00 : f32
    %45 = vector.broadcast %cst_13 : f32 to vector<1x128xf32>
    %46 = arith.select %40, %44, %45 : vector<1x128xi1>, vector<1x128xf32>
    %47 = vector.broadcast %19 : vector<64x1xf32> to vector<64x128xf32>
    %48 = vector.broadcast %38 : vector<1x128xf32> to vector<64x128xf32>
    %49 = arith.cmpf ogt, %47, %48 : vector<64x128xf32>
    %50 = vector.broadcast %19 : vector<64x1xf32> to vector<64x128xf32>
    %51 = vector.broadcast %46 : vector<1x128xf32> to vector<64x128xf32>
    %52 = arith.cmpf ole, %50, %51 : vector<64x128xf32>
    %53 = arith.andi %49, %52 : vector<64x128xi1>
    %54 = vector.broadcast %6 : vector<64x1xi1> to vector<64x128xi1>
    %55 = arith.andi %53, %54 : vector<64x128xi1>
    %56 = arith.extui %55 : vector<64x128xi1> to vector<64x128xi32>
    %57 = arith.sitofp %56 : vector<64x128xi32> to vector<64x128xf32>
    %58 = tpu.iota {dimensions = array<i32: 1>} : vector<64x8xi32>
    %c0_i32 = arith.constant 0 : i32
    %59 = vector.broadcast %c0_i32 : i32 to vector<64x8xi32>
    %60 = arith.cmpi eq, %58, %59 : vector<64x8xi32>
    %c1_i32 = arith.constant 1 : i32
    %61 = vector.broadcast %c1_i32 : i32 to vector<64x8xi32>
    %62 = arith.cmpi eq, %58, %61 : vector<64x8xi32>
    %c2_i32 = arith.constant 2 : i32
    %63 = vector.broadcast %c2_i32 : i32 to vector<64x8xi32>
    %64 = arith.cmpi eq, %58, %63 : vector<64x8xi32>
    %cst_14 = arith.constant 0.000000e+00 : f32
    %65 = vector.shape_cast %30 : vector<64x1xf32> to vector<64x1xf32>
    %66 = vector.broadcast %65 : vector<64x1xf32> to vector<64x8xf32>
    %67 = vector.broadcast %cst_14 : f32 to vector<64x8xf32>
    %68 = arith.select %64, %66, %67 : vector<64x8xi1>, vector<64x8xf32>
    %69 = vector.shape_cast %19 : vector<64x1xf32> to vector<64x1xf32>
    %70 = vector.broadcast %69 : vector<64x1xf32> to vector<64x8xf32>
    %71 = arith.select %62, %70, %68 : vector<64x8xi1>, vector<64x8xf32>
    %cst_15 = arith.constant 1.000000e+00 : f32
    %72 = vector.broadcast %cst_15 : f32 to vector<64x8xf32>
    %73 = arith.select %60, %72, %71 : vector<64x8xi1>, vector<64x8xf32>
    %cst_16 = arith.constant dense<0.000000e+00> : vector<8x128xf32>
    %74 = tpu.matmul %73, %57, %cst_16 {dimension_numbers = #tpu.dot_dimension_numbers<[0], [0], [1], [1], [0, 1, 1, 1], [], []>} : vector<64x8xf32>, vector<64x128xf32>, vector<8x128xf32> -> vector<8x128xf32>
    %c0_17 = arith.constant 0 : index
    %c0_18 = arith.constant 0 : index
    %c0_19 = arith.constant 0 : index
    %75 = vector.load %arg3[%c0_17, %c0_18, %c0_19] : memref<1x8x128xf32, #tpu.memory_space<vmem>>, vector<1x8x128xf32>
    %76 = vector.shape_cast %75 : vector<1x8x128xf32> to vector<8x128xf32>
    %77 = vector.shape_cast %74 : vector<8x128xf32> to vector<1x8x128xf32>
    tpu.vector_store %arg3[%c0_17, %c0_18, %c0_19], %77 {strides = array<i32>} : memref<1x8x128xf32, #tpu.memory_space<vmem>>, vector<1x8x128xf32>,
    return
  }
  func.func @transform_0(%arg0: i32) -> (i32, i32) {
    %c0_i32 = arith.constant 0 : i32
    %c0_i32_0 = arith.constant 0 : i32
    return %arg0, %c0_i32 : i32, i32
  }
  func.func @transform_1(%arg0: i32) -> (i32, i32) {
    %c0_i32 = arith.constant 0 : i32
    %c0_i32_0 = arith.constant 0 : i32
    return %arg0, %c0_i32 : i32, i32
  }
  func.func @transform_2(%arg0: i32) -> (i32, i32, i32) {
    %c0_i32 = arith.constant 0 : i32
    %c0_i32_0 = arith.constant 0 : i32
    %c0_i32_1 = arith.constant 0 : i32
    return %arg0, %c0_i32, %c0_i32_0 : i32, i32, i32
  }
}

</mosaic_0001>

<bundles_post_ra>
// kernel: tpu_custom_call.1
= control target key start
LH: loop header
LB: loop body
LE: loop exit
PB: predicated region body
PF: predicated region fallthrough
CT: control target
= control target key end

     0   :  { %vm71_vm0 = vcmask 130048   ;;  %s1289_s0 = inlined_call_operand.vmem [shape: f32[64,16], index: 0, kind: input, shape index: {}]   ;;  %s1290_s1 = inlined_call_operand.vmem [shape: s32[64,1], index: 1, kind: input, shape index: {}]   ;;  %s1291_s2 = inlined_call_operand.hbm [shape: f32[1,8,128], index: 2, kind: output, shape index: {}]  }
   0x1   :  { %v746_v0 = vld [vmem:[%s1289_s0 + $0x20] sm:$0xff]  ;;  %v751_v1 = vld [vmem:[%s1289_s0 + $0x10] sm:$0xff] }
   0x2   :  { %v756_v2 = vld [vmem:[%s1289_s0] sm:$0xff]  ;;  %v84_v3 = vsel %vm71_vm0, %v746_v0, -inf  ;;  %v78_v4 = vsel %vm71_vm0, %v751_v1, -inf }
   0x3   :  { %v72_v5 = vsel %vm71_vm0, %v756_v2, -inf  ;;  %85 = vmax.xlane.f32.xlu2 %v84_v3  ;;  %79 = vmax.xlane.f32.xlu1 %v78_v4 }
   0x4   :  { %73 = vmax.xlane.f32.xlu0 %v72_v5 }
   0x5   :  { %7 = vsyncpa [#allocation3], 0  ;;  %v767_v6 = vld [vmem:[%s1289_s0 + $0x28] sm:$0xff]  ;;  %v772_v7 = vld [vmem:[%s1289_s0 + $0x18] sm:$0xff]  ;;  %v264_v16 = vlaneseq  ;;  %s620_s15 = sshll.u32 %s1291_s2, 4  ;;  %s621_s15 = int_to_ptr.hbm [resolvable:$true] %s620_s15 }
   0x6   :  { %v13_v8 = vld [vmem:[%s1289_s0 + $0x8] sm:$0xff]  ;;  %v87_v9 = vsel %vm71_vm0, %v767_v6, -inf  ;;  %v81_v10 = vsel %vm71_vm0, %v772_v7, -inf  ;;  %v785_v12 = vld [vmem:[%s1289_s0 + $0x38] sm:$0xff]  ;;  %v790_v13 = vld [vmem:[%s1289_s0 + $0x30] sm:$0xff] }
   0x7   :  { %v75_v11 = vsel %vm71_vm0, %v13_v8, -inf  ;;  %v93_v14 = vsel %vm71_vm0, %v785_v12, -inf  ;;  %v90_v15 = vsel %vm71_vm0, %v790_v13, -inf  ;;  %v796_v17 = vand.u32 127, %v264_v16 }
   0xb   :  { %88 = vmax.xlane.f32.xlu2 %v87_v9  ;;  %82 = vmax.xlane.f32.xlu1 %v81_v10 }
   0xc   :  { %76 = vmax.xlane.f32.xlu0 %v75_v11 }
  0x13   :  { %94 = vmax.xlane.f32.xlu1 %v93_v14 }
  0x14   :  { %91 = vmax.xlane.f32.xlu0 %v90_v15 }
  0x76   :  { %v86_v18 = vpop.xlane.xlu2 %85  ;;  %v80_v19 = vpop.xlane.xlu1 %79 }
  0x77   :  { %vm268_vm1 = vcmp.ge.f32.partialorder %v751_v1, %v80_v19  ;;  %v799_v20 = vpop.xlane.xlu0 %73  ;;  %vm270_vm3 = vcmp.ge.f32.partialorder %v746_v0, %v86_v18  ;;  %v100_v40 = vsub.f32 %v746_v0, %v86_v18  ;;  %v98_v44 = vsub.f32 %v751_v1, %v80_v19 }
  0x78   :  { %v276_v21 = vsel %vm268_vm1, %v796_v17, 16  ;;  %vm266_vm2 = vcmp.ge.f32.partialorder %v756_v2, %v799_v20  ;;  %v278_v35 = vsel %vm270_vm3, %v796_v17, 16  ;;  %v96_v0 = vsub.f32 %v756_v2, %v799_v20 }
  0x79   :  { %v274_v22 = vsel %vm266_vm2, %v796_v17, 16  ;;  %v806_v23 = vsel %vm71_vm0, %v276_v21, 2147483647  ;;  %v848_v48 = vsel %vm71_vm0, %v278_v35, 2147483647 }
  0x7a   :  { %v809_v24 = vsel %vm71_vm0, %v274_v22, 2147483647  ;;  %v314_v25 = vshra.s32 %v806_v23, 16  ;;  %v112_v51 = vmul.f32 1.442695, %v100_v40  ;;  %v344_v54 = vshra.s32 %v848_v48, 16 }
  0x7b   :  { %v284_v26 = vshra.s32 %v809_v24, 16  ;;  %v108_v53 = vmul.f32 1.442695, %v98_v44  ;;  %v313_v21 = vand.u32 65535, %v806_v23  ;;  %v283_v22 = vand.u32 65535, %v809_v24 }
  0x7c   :  { %v813_v27 = vcvt.s32.f32 %v314_v25  ;;  %v871_v61 = vcvt.s32.f32 %v344_v54 }
  0x7d   :  { %v815_v28 = vcvt.s32.f32 %v284_v26  ;;  %v315_v26 = vcvt.s32.f32 %v313_v21 }
  0x7e   :  { %v89_v29 = vpop.xlane.xlu2 %88  ;;  %v818_v30 = vpop.xlane.xlu1 %82  ;;  %317 = vmin.xlane.f32.xlu1 %v813_v27 }
  0x7f   :  { %vm271_vm4 = vcmp.ge.f32.partialorder %v767_v6, %v89_v29  ;;  %vm269_vm5 = vcmp.ge.f32.partialorder %v772_v7, %v818_v30  ;;  %v77_v31 = vpop.xlane.xlu0 %76  ;;  %287 = vmin.xlane.f32.xlu2 %v815_v28  ;;  %v101_v60 = vsub.f32 %v767_v6, %v89_v29  ;;  %v99_v9 = vsub.f32 %v772_v7, %v818_v30 }
  0x80   :  { %v279_v32 = vsel %vm271_vm4, %v796_v17, 16  ;;  %v277_v33 = vsel %vm269_vm5, %v796_v17, 16  ;;  %v97_v34 = vsub.f32 %v13_v8, %v77_v31  ;;  %vm267_vm6 = vcmp.ge.f32.partialorder %v13_v8, %v77_v31 }
  0x81   :  { %v275_v36 = vsel %vm267_vm6, %v796_v17, 16  ;;  %v830_v38 = vsel %vm71_vm0, %v279_v32, 2147483647  ;;  %v833_v39 = vsel %vm71_vm0, %v277_v33, 2147483647  ;;  %v285_v30 = vcvt.s32.f32 %v283_v22 }
  0x82   :  { %v106_v37 = vmul.f32 1.442695, %v97_v34  ;;  %v359_v41 = vshra.s32 %v830_v38, 16  ;;  %v329_v42 = vshra.s32 %v833_v39, 16  ;;  %v839_v43 = vsel %vm71_vm0, %v275_v36, 2147483647 }
  0x83   :  { %v299_v45 = vshra.s32 %v839_v43, 16  ;;  %v114_v3 = vmul.f32 1.442695, %v101_v60  ;;  %v104_v8 = vmul.f32 1.442695, %v96_v0  ;;  %v358_v23 = vand.u32 65535, %v830_v38 }
  0x84   :  { %666 = vpow2.f32 %v106_v37  ;;  %v843_v46 = vcvt.s32.f32 %v359_v41  ;;  %v845_v47 = vcvt.s32.f32 %v329_v42  ;;  %v110_v14 = vmul.f32 1.442695, %v99_v9  ;;  %v404_v9 = vld [vmem:[%s1290_s1 + $0x10] sm:$0xff] }
  0x85   :  { %v850_v49 = vcvt.s32.f32 %v299_v45  ;;  %668 = vpow2.f32 %v112_v51  ;;  %v328_v24 = vand.u32 65535, %v833_v39  ;;  %v298_v33 = vand.u32 65535, %v839_v43 }
  0x86   :  { %v852_v50 = vpop.xlane.xlu1 %94  ;;  %362 = vmin.xlane.f32.xlu1 %v843_v46  ;;  %670 = vpow2.f32 %v108_v53  ;;  %v360_v35 = vcvt.s32.f32 %v358_v23  ;;  %v343_v43 = vand.u32 65535, %v848_v48  ;;  %v407_v23 = vld [vmem:[%s1290_s1 + $0x28] sm:$0xff] }
  0x87   :  { %v855_v52 = vpop.xlane.xlu0 %91  ;;  %vm273_vm7 = vcmp.ge.f32.partialorder %v785_v12, %v852_v50  ;;  %332 = vmin.xlane.f32.xlu2 %v845_v47  ;;  %302 = vmin.xlane.f32.xlu0 %v850_v49  ;;  %672 = vpow2.f32 %v114_v3  ;;  %v300_v38 = vcvt.s32.f32 %v298_v33 }
  0x88   :  { %vm272_vm8 = vcmp.ge.f32.partialorder %v790_v13, %v855_v52  ;;  %v281_v56 = vsel %vm273_vm7, %v796_v17, 16  ;;  %674 = vpow2.f32 %v104_v8  ;;  %v102_v37 = vsub.f32 %v790_v13, %v855_v52 }
  0x89   :  { %v280_v55 = vsel %vm272_vm8, %v796_v17, 16  ;;  %v876_v63 = vsel %vm71_vm0, %v281_v56, 2147483647  ;;  %676 = vpow2.f32 %v110_v14 }
  0x8a   :  { %v867_v57 = vsel %vm71_vm0, %v280_v55, 2147483647  ;;  %v667_v58 = vpop.eup %666  ;;  %v389_v4 = vshra.s32 %v876_v63, 16  ;;  %v116_v44 = vmul.f32 1.442695, %v102_v37  ;;  %v388_v48 = vand.u32 65535, %v876_v63 }
  0x8b   :  { %v374_v59 = vshra.s32 %v867_v57, 16  ;;  %v123_v1 = vsel %vm71_vm0, %v667_v58, 0.0  ;;  %v669_v5 = vpop.eup %668  ;;  %v373_v42 = vand.u32 65535, %v867_v57 }
  0x8c   :  { %v671_v6 = vpop.eup %670  ;;  %v886_v10 = vcvt.s32.f32 %v389_v4  ;;  %v132_v2 = vsel %vm71_vm0, %v669_v5, 0.0  ;;  %678 = vpow2.f32 %v116_v44  ;;  %v390_v56 = vcvt.s32.f32 %v388_v48  ;;  %v408_v48 = vld [vmem:[%s1290_s1 + $0x30] sm:$0xff] }
  0x8d   :  { %v873_v62 = vcvt.s32.f32 %v374_v59  ;;  %v126_v11 = vsel %vm71_vm0, %v671_v6, 0.0  ;;  %v673_v15 = vpop.eup %672  ;;  %v724_v59 = vmov 0  }
  0x8e   :  { %124 = vadd.xlane.f32.xlu1 %v123_v1  ;;  %v675_v16 = vpop.eup %674  ;;  %v135_v18 = vsel %vm71_vm0, %v673_v15, 0.0  ;;  %665 = vset.pattern.permute.xlu2 %v724_v59 }
  0x8f   :  { %347 = vmin.xlane.f32.xlu0 %v871_v61  ;;  %377 = vmin.xlane.f32.xlu2 %v873_v62  ;;  %v120_v19 = vsel %vm71_vm0, %v675_v16, 0.0  ;;  %v677_v7 = vpop.eup %676  ;;  %v725_v16 = vmov 0.0  }
  0x90   :  { %v129_v20 = vsel %vm71_vm0, %v677_v7, 0.0  ;;  %664 = vset.pattern.permute.xlu1 %v724_v59  ;;  %658 = vset.pattern.permute.xlu0 %v724_v59 }
  0x92   :  { %v679_v54 = vpop.eup %678 }
  0x93   :  { %v138_v57 = vsel %vm71_vm0, %v679_v54, 0.0 }
  0x96   :  { %133 = vadd.xlane.f32.xlu1 %v132_v2 }
  0x97   :  { %392 = vmin.xlane.f32.xlu0 %v886_v10  ;;  %127 = vadd.xlane.f32.xlu2 %v126_v11 }
  0x9f   :  { %121 = vadd.xlane.f32.xlu0 %v120_v19  ;;  %136 = vadd.xlane.f32.xlu2 %v135_v18 }
  0xa7   :  { %130 = vadd.xlane.f32.xlu0 %v129_v20 }
  0xf1   :  { %v896_v25 = vpop.xlane.xlu1 %317 }
  0xf2   :  { %v898_v29 = vpop.xlane.xlu2 %287  ;;  %vm319_vm9 = vcmp.eq.f32.partialorder %v813_v27, %v896_v25  ;;  %v324_v1 = vcvt.f32.s32 %v896_v25 }
  0xf3   :  { %v320_v31 = vsel %vm319_vm9, %v315_v26, inf  ;;  %vm289_vm10 = vcmp.eq.f32.partialorder %v815_v28, %v898_v29  ;;  %v330_v28 = vcvt.s32.f32 %v328_v24  ;;  %vm435_vm9 = vcmp.lt.s32.totalorder %v796_v17, 15 }
  0xf4   :  { %321 = vmin.xlane.f32.xlu0 %v320_v31  ;;  %v290_v32 = vsel %vm289_vm10, %v285_v30, inf  ;;  %v325_v4 = vshll.u32 %v324_v1, 16  ;;  %v402_v30 = vld [vmem:[%s1290_s1] sm:$0xff] }
  0xf5   :  { %291 = vmin.xlane.f32.xlu1 %v290_v32 }
  0xf9   :  { %v907_v34 = vpop.xlane.xlu1 %362 }
  0xfa   :  { %v909_v36 = vpop.xlane.xlu2 %332  ;;  %v911_v27 = vpop.xlane.xlu0 %302  ;;  %vm364_vm11 = vcmp.eq.f32.partialorder %v843_v46, %v907_v34  ;;  %v375_v46 = vcvt.s32.f32 %v373_v42  ;;  %v369_v11 = vcvt.f32.s32 %v907_v34 }
  0xfb   :  { %v365_v40 = vsel %vm364_vm11, %v360_v35, inf  ;;  %vm334_vm12 = vcmp.eq.f32.partialorder %v845_v47, %v909_v36  ;;  %vm304_vm13 = vcmp.eq.f32.partialorder %v850_v49, %v911_v27  ;;  %v345_v47 = vcvt.s32.f32 %v343_v43  ;;  %v405_v35 = vld [vmem:[%s1290_s1 + $0x18] sm:$0xff] }
  0xfc   :  { %366 = vmin.xlane.f32.xlu0 %v365_v40  ;;  %v335_v39 = vsel %vm334_vm12, %v330_v28, inf  ;;  %v305_v41 = vsel %vm304_vm13, %v300_v38, inf  ;;  %v103_v49 = vsub.f32 %v785_v12, %v852_v50  ;;  %v339_v15 = vcvt.f32.s32 %v909_v36 }
  0xfd   :  { %336 = vmin.xlane.f32.xlu1 %v335_v39  ;;  %306 = vmin.xlane.f32.xlu2 %v305_v41  ;;  %v309_v7 = vcvt.f32.s32 %v911_v27  ;;  %v370_v21 = vshll.u32 %v369_v11, 16  ;;  %v403_v27 = vld [vmem:[%s1290_s1 + $0x8] sm:$0xff] }
  0xfe   :  { %v118_v53 = vmul.f32 1.442695, %v103_v49 }
  0xff   :  { %v310_v24 = vshll.u32 %v309_v7, 16 }
 0x100   :  { %680 = vpow2.f32 %v118_v53 }
 0x102   :  { %v923_v45 = vpop.xlane.xlu2 %377  ;;  %v925_v13 = vpop.xlane.xlu0 %347 }
 0x103   :  { %vm379_vm14 = vcmp.eq.f32.partialorder %v873_v62, %v923_v45  ;;  %vm349_vm15 = vcmp.eq.f32.partialorder %v871_v61, %v925_v13  ;;  %v942_v61 = vpop.xlane.xlu1 %124  ;;  %v384_v37 = vcvt.f32.s32 %v923_v45  ;;  %v354_v38 = vcvt.f32.s32 %v925_v13 }
 0x104   :  { %v380_v51 = vsel %vm379_vm14, %v375_v46, inf  ;;  %v350_v52 = vsel %vm349_vm15, %v345_v47, inf  ;;  %682 = vrcp.f32 %v942_v61 }
 0x105   :  { %381 = vmin.xlane.f32.xlu1 %v380_v51  ;;  %351 = vmin.xlane.f32.xlu2 %v350_v52  ;;  %v385_v46 = vshll.u32 %v384_v37, 16  ;;  %v355_v49 = vshll.u32 %v354_v38, 16  ;;  %v406_v52 = vld [vmem:[%s1290_s1 + $0x20] sm:$0xff] }
 0x106   :  { %v681_v12 = vpop.eup %680 }
 0x107   :  { %v141_v50 = vsel %vm71_vm0, %v681_v12, 0.0 }
 0x10a   :  { %v934_v55 = vpop.xlane.xlu0 %392  ;;  %v948_v0 = vpop.xlane.xlu2 %127 }
 0x10b   :  { %vm394_vm1 = vcmp.eq.f32.partialorder %v886_v10, %v934_v55  ;;  %v946_v63 = vpop.xlane.xlu1 %133  ;;  %v294_v10 = vcvt.f32.s32 %v898_v29  ;;  %v340_v29 = vshll.u32 %v339_v15, 16  ;;  %v399_v54 = vcvt.f32.s32 %v934_v55 }
 0x10c   :  { %v395_v58 = vsel %vm394_vm1, %v390_v56, inf  ;;  %684 = vrcp.f32 %v946_v63  ;;  %v989_v56 = vpop.eup %682  ;;  %vm209_vm10 = vweird.f32 %v946_v63  ;;  %v213_v38 = vand.u32 2147483647, %v946_v63 }
 0x10d   :  { %139 = vadd.xlane.f32.xlu1 %v138_v57  ;;  %396 = vmin.xlane.f32.xlu2 %v395_v58  ;;  %v295_v19 = vshll.u32 %v294_v10, 16  ;;  %v434_v58 = vcvt.s32.f32 %v796_v17  ;;  %v160_v1 = vmul.f32 %v989_v56, %v942_v61  ;;  %vm179_vm13 = vweird.f32 %v948_v0 }
 0x10f   :  { %v161_v15 = vsub.f32 1.0, %v160_v1 }
 0x112   :  { %v940_v60 = vpop.xlane.xlu0 %121  ;;  %v951_v8 = vpop.xlane.xlu2 %136 }
 0x113   :  { %686 = vrcp.f32 %v951_v8  ;;  %v999_v59 = vpop.eup %684  ;;  %vm224_vm11 = vweird.f32 %v951_v8 }
 0x114   :  { %688 = vrcp.f32 %v948_v0  ;;  %v205_v11 = vmul.f32 %v999_v59, %v946_v63  ;;  %vm210_vm12 = vweird.f32 %v999_v59 }
 0x115   :  { %142 = vadd.xlane.f32.xlu2 %v141_v50 }
 0x11a   :  { %v944_v62 = vpop.xlane.xlu0 %130 }
 0x11b   :  { %690 = vrcp.f32 %v944_v62 }
 0x167   :  { %v322_v3 = vpop.xlane.xlu0 %321 }
 0x168   :  { %v292_v5 = vpop.xlane.xlu1 %291  ;;  %v323_v6 = vcvt.f32.s32 %v322_v3  ;;  %v400_v3 = vshll.u32 %v399_v54, 16 }
 0x169   :  { %v293_v14 = vcvt.f32.s32 %v292_v5  ;;  %v409_v5 = vld [vmem:[%s1290_s1 + $0x38] sm:$0xff]  ;;  %s727_s1 = smov [#allocation2]  }
 0x16a   :  { %v326_v2 = vadd.s32 %v325_v4, %v323_v6  ;;  %v438_v6 = vadd.f32 1.0, %v434_v58  ;;  %s618_s12 = sshll.u32 %s727_s1, 4  ;;  %s619_s12 = int_to_ptr.vmem [resolvable:$true] %s618_s12 }
 0x16b   :  { %v296_v22 = vadd.s32 %v295_v19, %v293_v14 }
 0x16c   :  { %vm412_vm0 = vcmp.eq.s32.totalorder %v326_v2, %v404_v9  ;;  %v1006_v9 = vpop.eup %686 }
 0x16d   :  { %v631_v18 = vsel %vm412_vm0, 1.0, %v725_v16  ;;  %vm410_vm2 = vcmp.eq.s32.totalorder %v296_v22, %v402_v30  ;;  %v1008_v2 = vpop.eup %688  ;;  %v220_v7 = vmul.f32 %v1006_v9, %v951_v8  ;;  %vm225_vm14 = vweird.f32 %v1006_v9 }
 0x16e   :  { %504 = vperm.xlu1 %664, %v631_v18   ;;  %v629_v41 = vsel %vm410_vm2, 1.0, %v725_v16  ;;  %v1012_v14 = vpop.eup %690  ;;  %v436_v18 = vmul.f32 0.06666667, %v434_v58  ;;  %v175_v22 = vmul.f32 %v1008_v2, %v948_v0  ;;  %vm180_vm15 = vweird.f32 %v1008_v2 }
 0x16f   :  { %v367_v20 = vpop.xlane.xlu0 %366  ;;  %vm1065_vm0 = vcmp.eq.f32.partialorder %v213_v38, 8.507059e+37  ;;  %vm194_vm2 = vweird.f32 %v944_v62 }
 0x170   :  { %v337_v25 = vpop.xlane.xlu1 %336  ;;  %v368_v26 = vcvt.f32.s32 %v367_v20  ;;  %v307_v32 = vpop.xlane.xlu2 %306 }
 0x171   :  { %v338_v31 = vcvt.f32.s32 %v337_v25  ;;  %v308_v33 = vcvt.f32.s32 %v307_v32 }
 0x172   :  { %v371_v34 = vadd.s32 %v370_v21, %v368_v26  ;;  %v439_v21 = vmul.f32 0.06666667, %v438_v6  ;;  %v206_v26 = vsub.f32 1.0, %v205_v11 }
 0x173   :  { %v341_v36 = vadd.s32 %v340_v29, %v338_v31  ;;  %v311_v28 = vadd.s32 %v310_v24, %v308_v33  ;;  %v215_v29 = vand.u32 2147483648, %v946_v63  ;;  %v162_v31 = vmul.f32 %v989_v56, %v161_v15 }
 0x174   :  { %vm415_vm3 = vcmp.eq.s32.totalorder %v371_v34, %v407_v23  ;;  %v221_v23 = vsub.f32 1.0, %v220_v7  ;;  %v1032_v24 = vsel %vm435_vm9, %v436_v18, 2.0  ;;  %v1034_v33 = vsel %vm435_vm9, %v439_v21, 3.0 }
 0x175   :  { %vm413_vm4 = vcmp.eq.s32.totalorder %v341_v36, %v405_v35  ;;  %v634_v40 = vsel %vm415_vm3, 1.0, %v725_v16  ;;  %vm411_vm5 = vcmp.eq.s32.totalorder %v311_v28, %v403_v27  ;;  %v170_v34 = vand.u32 2147483648, %v942_v61 }
 0x176   :  { %v632_v39 = vsel %vm413_vm4, 1.0, %v725_v16  ;;  %519 = vperm.xlu1 %664, %v634_v40   ;;  %v630_v42 = vsel %vm411_vm5, 1.0, %v725_v16  ;;  %v176_v35 = vsub.f32 1.0, %v175_v22  ;;  %v230_v36 = vand.u32 2147483648, %v951_v8  ;;  %vm1081_vm5 = vmor %vm224_vm11, %vm225_vm14 }
 0x177   :  { %509 = vperm.xlu2 %665, %v632_v39   ;;  %v659_v44 = vpack.i.bf16 %v630_v42, %v629_v41  ;;  %v185_v28 = vand.u32 2147483648, %v948_v0  ;;  %v207_v37 = vmul.f32 %v999_v59, %v206_v26  ;;  %v1045_v39 = vor.u32 1.1754944e-38, %v215_v29  ;;  %vm1103_vm11 = vmor %vm209_vm10, %vm210_vm12 }
 0x178   :  { %v382_v43 = vpop.xlane.xlu1 %381  ;;  %v352_v47 = vpop.xlane.xlu2 %351  ;;  %v183_v42 = vand.u32 2147483647, %v948_v0  ;;  %vm165_vm3 = vweird.f32 %v989_v56  ;;  %v153_v0 = vand.u32 2147483647, %v940_v60 }
 0x179   :  { %v383_v45 = vcvt.f32.s32 %v382_v43  ;;  %v353_v51 = vcvt.f32.s32 %v352_v47  ;;  %660 = vperm.xlu0 %658, %v659_v44   ;;  %v1049_v43 = vadd.f32 %v989_v56, %v162_v31  ;;  %v222_v44 = vmul.f32 %v1006_v9, %v221_v23 }
 0x17a   :  { %v177_v47 = vmul.f32 %v1008_v2, %v176_v35 }
 0x17b   :  { %v386_v13 = vadd.s32 %v385_v46, %v383_v45  ;;  %v356_v53 = vadd.s32 %v355_v49, %v353_v51  ;;  %v228_v46 = vand.u32 2147483647, %v951_v8  ;;  %v231_v51 = vor.u32 1.1754944e-38, %v230_v36 }
 0x17c   :  { %v223_v1 = vadd.f32 %v1006_v9, %v222_v44  ;;  %v178_v21 = vadd.f32 %v1008_v2, %v177_v47  ;;  %v168_v36 = vand.u32 2147483647, %v942_v61 }
 0x17d   :  { %vm414_vm6 = vcmp.eq.s32.totalorder %v356_v53, %v406_v52  ;;  %vm416_vm7 = vcmp.eq.s32.totalorder %v386_v13, %v408_v48  ;;  %v208_v48 = vadd.f32 %v999_v59, %v207_v37  ;;  %vm1107_vm14 = vcmp.eq.f32.partialorder %v228_v46, 8.507059e+37 }
 0x17e   :  { %v633_v57 = vsel %vm414_vm6, 1.0, %v725_v16  ;;  %v635_v50 = vsel %vm416_vm7, 1.0, %v725_v16  ;;  %vm164_vm6 = vweird.f32 %v942_v61  ;;  %v227_v63 = vsel %vm1081_vm5, %v1006_v9, %v223_v1 }
 0x17f   :  { %514 = vperm.xlu2 %665, %v633_v57   ;;  %v200_v57 = vand.u32 2147483648, %v944_v62  ;;  %v726_v37 = vmov 1.0  }
 0x180   :  { %v995_v12 = vpop.xlane.xlu1 %139  ;;  %v397_v55 = vpop.xlane.xlu2 %396 }
 0x181   :  { %692 = vrcp.f32 %v995_v12  ;;  %v398_v4 = vcvt.f32.s32 %v397_v55  ;;  %524 = vperm.xlu0 %658, %v635_v50   ;;  %v245_v58 = vand.u32 2147483648, %v995_v12  ;;  %vm239_vm4 = vweird.f32 %v995_v12 }
 0x182   :  { %694 = vrcp.f32 %v940_v60  ;;  %v243_v50 = vand.u32 2147483647, %v995_v12 }
 0x183   :  { %v401_v10 = vadd.s32 %v400_v3, %v398_v4  ;;  %v246_v18 = vor.u32 1.1754944e-38, %v245_v58 }
 0x185   :  { %vm417_vm8 = vcmp.eq.s32.totalorder %v401_v10, %v409_v5 }
 0x186   :  { %v636_v20 = vsel %vm417_vm8, 1.0, %v725_v16  ;;  %v190_v16 = vmul.f32 %v1012_v14, %v944_v62  ;;  %vm195_vm8 = vweird.f32 %v1012_v14 }
 0x187   :  { %v1014_v19 = vpop.eup %692  ;;  %529 = vperm.xlu2 %665, %v636_v20   ;;  %vm1121_vm10 = vmor %vm194_vm2, %vm195_vm8 }
 0x188   :  { %v235_v25 = vmul.f32 %v1014_v19, %v995_v12  ;;  %v1026_v30 = vpop.xlane.xlu2 %142  ;;  %v1039_v27 = vpop.eup %694  ;;  %v191_v41 = vsub.f32 1.0, %v190_v16  ;;  %vm240_vm1 = vweird.f32 %v1014_v19  ;;  %v198_v12 = vand.u32 2147483647, %v944_v62 }
 0x189   :  { %696 = vrcp.f32 %v1026_v30  ;;  %v145_v49 = vmul.f32 %v1039_v27, %v940_v60  ;;  %v260_v5 = vand.u32 2147483648, %v1026_v30  ;;  %vm1089_vm7 = vmor %vm239_vm4, %vm240_vm1  ;;  %v258_v10 = vand.u32 2147483647, %v1026_v30 }
 0x18a   :  { %v236_v32 = vsub.f32 1.0, %v235_v25  ;;  %v192_v54 = vmul.f32 %v1012_v14, %v191_v41  ;;  %vm254_vm1 = vweird.f32 %v1026_v30  ;;  %vm244_vm4 = vcmp.eq.f32.partialorder %v243_v50, 8.507059e+37 }
 0x18b   :  { %v146_v4 = vsub.f32 1.0, %v145_v49  ;;  %v201_v25 = vor.u32 1.1754944e-38, %v200_v57  ;;  %v261_v26 = vor.u32 1.1754944e-38, %v260_v5  ;;  %vm259_vm5 = vcmp.eq.f32.partialorder %v258_v10, 8.507059e+37 }
 0x18c   :  { %v237_v40 = vmul.f32 %v1014_v19, %v236_v32  ;;  %v193_v20 = vadd.f32 %v1012_v14, %v192_v54  ;;  %v1139_v32 = vsel %vm1107_vm14, %v231_v51, %v227_v63  ;;  %vm1156_vm14 = vmor %vm179_vm13, %vm180_vm15 }
 0x18d   :  { %v147_v31 = vmul.f32 %v1039_v27, %v146_v4  ;;  %vm446_vm13 = vcmp.gt.f32.partialorder %v1139_v32, %v1032_v24  ;;  %vm454_vm15 = vcmp.le.f32.partialorder %v1139_v32, %v1034_v33 }
 0x18e   :  { %v238_v52 = vadd.f32 %v1014_v19, %v237_v40  ;;  %v197_v23 = vsel %vm1121_vm10, %v1012_v14, %v193_v20  ;;  %v186_v14 = vor.u32 1.1754944e-38, %v185_v28  ;;  %v182_v28 = vsel %vm1156_vm14, %v1008_v2, %v178_v21 }
 0x18f   :  { %v697_v45 = vpop.eup %696  ;;  %v148_v38 = vadd.f32 %v1039_v27, %v147_v31  ;;  %vm149_vm10 = vweird.f32 %v940_v60 }
 0x190   :  { %v250_v13 = vmul.f32 %v697_v45, %v1026_v30  ;;  %vm255_vm9 = vweird.f32 %v697_v45  ;;  %v242_v11 = vsel %vm1089_vm7, %v1014_v19, %v238_v52  ;;  %v212_v30 = vsel %vm1103_vm11, %v999_v59, %v208_v48 }
 0x191   :  { %vm256_vm12 = vmor %vm254_vm1, %vm255_vm9  ;;  %v1125_v29 = vsel %vm244_vm4, %v246_v18, %v242_v11  ;;  %vm1131_vm7 = vcmp.eq.f32.partialorder %v198_v12, 8.507059e+37  ;;  %v1165_v35 = vsel %vm1065_vm0, %v1045_v39, %v212_v30  ;;  %vm150_vm4 = vweird.f32 %v1039_v27 }
 0x192   :  { %v251_v55 = vsub.f32 1.0, %v250_v13  ;;  %vm447_vm9 = vcmp.gt.f32.partialorder %v1125_v29, %v1032_v24  ;;  %vm455_vm11 = vcmp.le.f32.partialorder %v1125_v29, %v1034_v33  ;;  %vm1180_vm0 = vmor %vm164_vm6, %vm165_vm3  ;;  %v155_v39 = vand.u32 2147483648, %v940_v60 }
 0x193   :  { %v202_v2 = vsel %vm1131_vm7, %v201_v25, %v197_v23  ;;  %vm184_vm3 = vcmp.eq.f32.partialorder %v183_v42, 8.507059e+37  ;;  %vm445_vm6 = vcmp.gt.f32.partialorder %v1165_v35, %v1032_v24  ;;  %v167_v41 = vsel %vm1180_vm0, %v989_v56, %v1049_v43  ;;  %vm462_vm7 = vmand %vm446_vm13, %vm454_vm15 }
 0x194   :  { %v252_v8 = vmul.f32 %v697_v45, %v251_v55  ;;  %v171_v42 = vor.u32 1.1754944e-38, %v170_v34  ;;  %v187_v46 = vsel %vm184_vm3, %v186_v14, %v182_v28  ;;  %v156_v61 = vor.u32 1.1754944e-38, %v155_v39 }
 0x195   :  { %vm154_vm13 = vcmp.eq.f32.partialorder %v153_v0, 8.507059e+37 }
 0x196   :  { %v253_v19 = vadd.f32 %v697_v45, %v252_v8 }
 0x198   :  { %v257_v9 = vsel %vm256_vm12, %v697_v45, %v253_v19  ;;  %vm463_vm12 = vmand %vm447_vm9, %vm455_vm11  ;;  %vm452_vm9 = vcmp.le.f32.partialorder %v202_v2, %v1034_v33  ;;  %vm169_vm11 = vcmp.eq.f32.partialorder %v168_v36, 8.507059e+37 }
 0x199   :  { %v1135_v62 = vsel %vm259_vm5, %v261_v26, %v257_v9  ;;  %vm453_vm5 = vcmp.le.f32.partialorder %v1165_v35, %v1034_v33  ;;  %v172_v56 = vsel %vm169_vm11, %v171_v42, %v167_v41  ;;  %vm588_vm11 = vcmask 523264  }
 0x19a   :  { %vm448_vm2 = vcmp.gt.f32.partialorder %v1135_v62, %v1032_v24  ;;  %vm456_vm8 = vcmp.le.f32.partialorder %v1135_v62, %v1034_v33  ;;  %vm461_vm14 = vmand %vm445_vm6, %vm453_vm5  ;;  %vm442_vm0 = vcmp.gt.f32.partialorder %v172_v56, %v1032_v24 }
 0x19b   :  { %vm464_vm1 = vmand %vm448_vm2, %vm456_vm8  ;;  %vm444_vm8 = vcmp.gt.f32.partialorder %v202_v2, %v1032_v24 }
 0x19c   :  { %645 = vmatpush.msk.msra.mxu0 %vm464_vm1, %v726_v37  ;;  %vm1207_vm2 = vmor %vm149_vm10, %vm150_vm4  ;;  %vm443_vm1 = vcmp.gt.f32.partialorder %v187_v46, %v1032_v24  ;;  %vm451_vm4 = vcmp.le.f32.partialorder %v187_v46, %v1034_v33  ;;  %vm450_vm10 = vcmp.le.f32.partialorder %v172_v56, %v1034_v33 }
 0x19d   :  { %v152_v60 = vsel %vm1207_vm2, %v1039_v27, %v148_v38  ;;  %vm460_vm15 = vmand %vm444_vm8, %vm452_vm9  ;;  %vm490_vm8 = vcmp.eq.s32.totalorder %v796_v17, 1  ;;  %vm489_vm9 = vcmp.eq.s32.totalorder %v796_v17, 0 }
 0x19e   :  { %646 = vmatpush.msk.msra.mxu0 %vm463_vm12, %v726_v37  ;;  %v157_v34 = vsel %vm154_vm13, %v156_v61, %v152_v60  ;;  %vm459_vm12 = vmand %vm443_vm1, %vm451_vm4 }
 0x19f   :  { %vm441_vm3 = vcmp.gt.f32.partialorder %v157_v34, %v1032_v24  ;;  %vm449_vm6 = vcmp.le.f32.partialorder %v157_v34, %v1034_v33  ;;  %vm458_vm5 = vmand %vm442_vm0, %vm450_vm10 }
 0x1a0   :  { %647 = vmatpush.msk.msra.mxu0 %vm462_vm7, %v726_v37  ;;  %vm457_vm2 = vmand %vm441_vm3, %vm449_vm6  ;;  %vm491_vm7 = vcmp.eq.s32.totalorder %v796_v17, 2 }
 0x1a2   :  { %648 = vmatpush.msk.msra.mxu0 %vm461_vm14, %v726_v37 }
 0x1a4   :  { %649 = vmatpush.msk.msra.mxu0 %vm460_vm15, %v726_v37 }
 0x1a6   :  { %650 = vmatpush.msk.msra.mxu0 %vm459_vm12, %v726_v37 }
 0x1a8   :  { %651 = vmatpush.msk.msra.mxu0 %vm458_vm5, %v726_v37 }
 0x1aa   :  { %652 = vmatpush.msk.msra.mxu0 %vm457_vm2, %v726_v37 }
 0x1d1   :  { %v510_v53 = vpop.permute.xlu2 %509 }
 0x1d2   :  { %v535_v58 = vsel %vm491_vm7, %v510_v53, 0.0 }
 0x1d3   :  { %v543_v55 = vsel %vm490_vm8, %v202_v2, %v535_v58 }
 0x1d4   :  { %v551_v1 = vsel %vm489_vm9, 1.0, %v543_v55 }
 0x1d9   :  { %v515_v50 = vpop.permute.xlu2 %514 }
 0x1da   :  { %v536_v3 = vsel %vm491_vm7, %v515_v50, 0.0 }
 0x1db   :  { %v544_v4 = vsel %vm490_vm8, %v1165_v35, %v536_v3 }
 0x1dc   :  { %v552_v6 = vsel %vm489_vm9, 1.0, %v544_v4 }
 0x1e0   :  { %v505_v13 = vpop.permute.xlu1 %504 }
 0x1e1   :  { %v534_v48 = vsel %vm491_vm7, %v505_v13, 0.0  ;;  %v530_v7 = vpop.permute.xlu2 %529 }
 0x1e2   :  { %v542_v54 = vsel %vm490_vm8, %v187_v46, %v534_v48  ;;  %v539_v21 = vsel %vm491_vm7, %v530_v7, 0.0 }
 0x1e3   :  { %v550_v57 = vsel %vm489_vm9, 1.0, %v542_v54  ;;  %v547_v19 = vsel %vm490_vm8, %v1135_v62, %v539_v21 }
 0x1e4   :  { %v555_v63 = vsel %vm489_vm9, 1.0, %v547_v19 }
 0x1e8   :  { %v520_v5 = vpop.permute.xlu1 %519 }
 0x1e9   :  { %v537_v12 = vsel %vm491_vm7, %v520_v5, 0.0 }
 0x1ea   :  { %v545_v8 = vsel %vm490_vm8, %v1139_v32, %v537_v12 }
 0x1eb   :  { %v661_v27 = vpop.permute.xlu0 %660  ;;  %v553_v11 = vsel %vm489_vm9, 1.0, %v545_v8 }
 0x1ec   :  { %v662_v43 = vunpack.i.l.bf16 %v661_v27  ;;  %v663_v45 = vunpack.i.h.bf16 %v661_v27 }
 0x1ee   :  { %v532_v47 = vsel %vm491_vm7, %v662_v43, 0.0  ;;  %v533_v49 = vsel %vm491_vm7, %v663_v45, 0.0 }
 0x1ef   :  { %v540_v24 = vsel %vm490_vm8, %v157_v34, %v532_v47  ;;  %v541_v51 = vsel %vm490_vm8, %v172_v56, %v533_v49 }
 0x1f0   :  { %v548_v33 = vsel %vm489_vm9, 1.0, %v540_v24  ;;  %v549_v52 = vsel %vm489_vm9, 1.0, %v541_v51 }
 0x1f1   :  { %556 = vxpose.xlu1.b32.start [1/8] (short) (narrow) %v548_v33, 8 }
 0x1f3   :  { %v525_v10 = vpop.permute.xlu0 %524 }
 0x1f4   :  { %v538_v15 = vsel %vm491_vm7, %v525_v10, 0.0 }
 0x1f5   :  { %v546_v18 = vsel %vm490_vm8, %v1125_v29, %v538_v15 }
 0x1f6   :  { %v554_v20 = vsel %vm489_vm9, 1.0, %v546_v18 }
 0x1f9   :  { %557 = vxpose.xlu1.b32.cont [2/8] (short) (narrow) %v549_v52, 8 }
 0x201   :  { %558 = vxpose.xlu1.b32.cont [3/8] (short) (narrow) %v550_v57, 8 }
 0x209   :  { %559 = vxpose.xlu1.b32.cont [4/8] (short) (narrow) %v551_v1, 8 }
 0x211   :  { %560 = vxpose.xlu1.b32.cont [5/8] (short) (narrow) %v552_v6, 8 }
 0x219   :  { %561 = vxpose.xlu1.b32.cont [6/8] (short) (narrow) %v553_v11, 8 }
 0x221   :  { %562 = vxpose.xlu1.b32.cont [7/8] (short) (narrow) %v554_v20, 8 }
 0x229   :  { %563 = vxpose.xlu1.b32.end [8/8] (short) (narrow) %v555_v63, 8 }
 0x295   :  { %v572_v22 = vpop.trf.xlu1 }
 0x296   :  { %653 = vmatmul.msk.f32.vlgmr.msra.gmra.mxu0 %vm588_vm11, %v572_v22 }
 0x313   :  { %v609_v25 = vpop.f32.mrf.mxu0 }
 0x314   :  { %612 = vst [vmem:[#allocation2] sm:$0xff] %v609_v25 }
 0x315   :  { %623 = dma.vmem_to_hbm [thread:$0]  %s619_s12, 128, %s621_s15, [#allocation3]  }
 0x316   :  { %722 = dma.done.wait [#allocation3], 128  }
 0x317   :  { %723 = vsyncadd [#allocation3], 4294967168 }
 0x318   :  { %628 = vsyncpa [#allocation3], 1 }

</bundles_post_ra>
